<compile_context>
chip_gen: v6e
topology: v6e:2x2x1
jax: 0.10.0
libtpu: 0.0.40
codegen_flags: <defaults>
</compile_context>

<pallas_src>
import functools
import math

import jax
import jax.numpy as jnp
from jax.experimental import pallas as pl
from jax.experimental.pallas import tpu as pltpu


# ---------------------------------------------------------------------------
# Fused ProbSparse attention core (Pallas).
# ---------------------------------------------------------------------------
def _sparse_attn_core_kernel(q_ref, k_ref, v_ref, idx_ref, o_ref, *, scale,
                             mask_flag):
    """One (batch*head) slice: masked softmax(Q_top @ K^T * scale) @ V, fused.

    Block shapes (leading grid dim squeezed via [0]):
      q_ref:   (1, u,   D)   selected ("top") queries
      k_ref:   (1, L_K, D)   full keys for this (b, h)
      v_ref:   (1, L_K, D)   full values for this (b, h)
      idx_ref: (1, u,   1)   original sequence position of each selected query
      o_ref:   (1, u,   D)   attn @ V for the selected queries
    """
    q = q_ref[0]                                   # (u, D)
    k = k_ref[0]                                   # (L_K, D)
    v = v_ref[0]                                   # (L_K, D)

    # Single MXU matmul for the scores, f32 accumulation, fused scaling.
    s = jax.lax.dot_general(
        q, k, dimension_numbers=(((1,), (1,)), ((), ())),
        preferred_element_type=jnp.float32) * scale            # (u, L_K)

    if mask_flag:
        # ProbMask: for a selected query originally at position p, key j is
        # masked iff j > p (strict upper triangle gathered at the top-k rows).
        idx = idx_ref[0]                                        # (u, 1) int32
        col = jax.lax.broadcasted_iota(jnp.int32, s.shape, 1)   # (u, L_K)
        s = jnp.where(col > idx, -jnp.inf, s)

    # Numerically stable softmax along L_K (lane axis).
    m = jnp.max(s, axis=-1, keepdims=True)
    p = jnp.exp(s - m)
    denom = jnp.sum(p, axis=-1, keepdims=True)
    attn = p / denom

    o = jnp.dot(attn.astype(v.dtype), v,
                preferred_element_type=jnp.float32)             # (u, D)
    o_ref[0] = o.astype(o_ref.dtype)


def _sparse_attn_core(q_reduce, keys, values, m_top, scale, mask_flag):
    """pallas_call wrapper: 1-D 'parallel' grid over fused (B*H)."""
    B, H, u, D = q_reduce.shape
    L_K = keys.shape[2]
    BH = B * H

    # NOTE: inputs are kept f32 here (verified against an f32 reference);
    # casting Q/K/V to bf16 before the call (f32 accumulation stays) is a
    # drop-in memory-bandwidth win if downstream tolerates it.
    q_r = q_reduce.reshape(BH, u, D)
    k_r = keys.reshape(BH, L_K, D)
    v_r = values.reshape(BH, L_K, D)
    idx_r = m_top.reshape(BH, u, 1).astype(jnp.int32)

    kernel = functools.partial(_sparse_attn_core_kernel, scale=scale,
                               mask_flag=mask_flag)

    # Advisory cost estimate so XLA schedules neighbouring ops around the call.
    flops = 4 * BH * u * L_K * D                          # QK^T + attn @ V
    bytes_accessed = 4 * (q_r.size + k_r.size + v_r.size + BH * u * D
                          + idx_r.size)
    cost = pl.CostEstimate(flops=flops, transcendentals=BH * u * L_K,
                           bytes_accessed=bytes_accessed)

    out = pl.pallas_call(
        kernel,
        out_shape=jax.ShapeDtypeStruct((BH, u, D), jnp.float32),
        grid=(BH,),
        in_specs=[
            pl.BlockSpec((1, u, D), lambda i: (i, 0, 0)),
            pl.BlockSpec((1, L_K, D), lambda i: (i, 0, 0)),
            pl.BlockSpec((1, L_K, D), lambda i: (i, 0, 0)),
            pl.BlockSpec((1, u, 1), lambda i: (i, 0, 0)),
        ],
        out_specs=pl.BlockSpec((1, u, D), lambda i: (i, 0, 0)),
        compiler_params=pltpu.CompilerParams(
            dimension_semantics=("parallel",)),
        cost_estimate=cost,
    )(q_r, k_r, v_r, idx_r)
    return out.reshape(B, H, u, D)


# ---------------------------------------------------------------------------
# Glue shared by the Pallas path and the pure-JAX reference.
# ---------------------------------------------------------------------------
def _top_query_selection(Q, K, index_sample, n_top):
    """ProbSparse query selection (mirrors torch _prob_QK's measure + topk)."""
    L_K = K.shape[2]
    K_sample = K[:, :, index_sample, :]                           # (B,H,L_Q,S,D)
    Q_K_sample = jnp.einsum('bhqd,bhqsd->bhqs', Q, K_sample)      # (B,H,L_Q,S)
    # NB: torch divides the sampled sum by L_K (not sample_k) — match it.
    M = Q_K_sample.max(axis=-1) - Q_K_sample.sum(axis=-1) / L_K   # (B,H,L_Q)
    M_top = jax.lax.top_k(M, n_top)[1]                            # (B,H,n_top)
    Q_reduce = jnp.take_along_axis(Q, M_top[..., None], axis=2)   # (B,H,n_top,D)
    return M_top, Q_reduce


def _initial_context(V, L_Q, mask_flag):
    B, H, L_V, D = V.shape
    if mask_flag:
        assert L_Q == L_V
        return jnp.cumsum(V, axis=2)
    v_mean = jnp.mean(V, axis=2, keepdims=True)
    return jnp.broadcast_to(v_mean, (B, H, L_Q, D))


def _scatter_update(context, update, m_top):
    B, H = context.shape[:2]
    b_idx = jnp.arange(B)[:, None, None]
    h_idx = jnp.arange(H)[None, :, None]
    return context.at[b_idx, h_idx, m_top, :].set(update.astype(context.dtype))


# ---------------------------------------------------------------------------
# Full forward (Pallas core) and pure-JAX reference.
# ---------------------------------------------------------------------------
def prob_attention(queries, keys, values, index_sample, *, factor=5,
                   scale=None, mask_flag=True):
    """ProbAttention forward; dense attention core runs in Pallas.

    Args:
      queries, keys, values: (B, L, H, D) float32.
      index_sample: (L_Q, U_part) int32 sampled key indices (torch.randint
        equivalent; shared across batch/head, as in the PyTorch code).
    Returns:
      (context, attn): context (B, L_Q, H, D) float32; attn is None
      (output_attention=False).
    """
    B, L_Q, H, D = queries.shape
    _, L_K, _, _ = keys.shape

    Q = jnp.transpose(queries, (0, 2, 1, 3))
    K = jnp.transpose(keys, (0, 2, 1, 3))
    V = jnp.transpose(values, (0, 2, 1, 3))

    u = min(int(factor * math.ceil(math.log(L_Q))), L_Q)

    # TODO(synk): random key sampling, top-k query selection and the row scatter
    # into the cumsum context are data-dependent gathers/scatters with no clean
    # Pallas equivalent; they stay as cheap XLA glue around the fused core.
    m_top, q_reduce = _top_query_selection(Q, K, index_sample, u)

    scale_val = float(scale) if scale is not None else 1.0 / math.sqrt(D)

    update = _sparse_attn_core(q_reduce, K, V, m_top, scale_val, mask_flag)

    context = _initial_context(V, L_Q, mask_flag)
    context = _scatter_update(context, update, m_top)

    # TODO(synk): output_attention=True (dense L_V x L_V attention map) path not
    # implemented; module default is False (and dropout is unused in the spec).
    return jnp.transpose(context, (0, 2, 1, 3)), None


def prob_attention_reference(queries, keys, values, index_sample, *, factor=5,
                             scale=None, mask_flag=True):
    """Pure-JAX (XLA) reference mirroring ProbAttention.forward."""
    B, L_Q, H, D = queries.shape
    _, L_K, _, _ = keys.shape
    Q = jnp.transpose(queries, (0, 2, 1, 3))
    K = jnp.transpose(keys, (0, 2, 1, 3))
    V = jnp.transpose(values, (0, 2, 1, 3))

    u = min(int(factor * math.ceil(math.log(L_Q))), L_Q)
    m_top, q_reduce = _top_query_selection(Q, K, index_sample, u)
    scale_val = float(scale) if scale is not None else 1.0 / math.sqrt(D)

    scores = jnp.einsum('bhud,bhkd->bhuk', q_reduce, K,
                        precision=jax.lax.Precision.HIGHEST) * scale_val
    if mask_flag:
        mask = jnp.arange(L_K)[None, None, None, :] > m_top[..., None]
        scores = jnp.where(mask, -jnp.inf, scores)
    attn = jax.nn.softmax(scores, axis=-1)
    update = jnp.einsum('bhuk,bhkd->bhud', attn, V,
                        precision=jax.lax.Precision.HIGHEST)

    context = _initial_context(V, L_Q, mask_flag)
    context = _scatter_update(context, update, m_top)
    return jnp.transpose(context, (0, 2, 1, 3)), None


if __name__ == "__main__":
    # Small shapes consistent with the module: (B, L_Q, H, D), d_model = H * D.
    # D = 128 keeps the Pallas output tile lane-dense (last dim multiple of 128)
    # per the perf review; L = 128 makes the sparse path non-degenerate
    # (u = 5 * ceil(ln 128) = 25 < L).
    B, L, H, D = 2, 128, 4, 128
    factor = 5

    key = jax.random.PRNGKey(0)
    kq, kk, kv, ks = jax.random.split(key, 4)
    queries = jax.random.normal(kq, (B, L, H, D), dtype=jnp.float32)
    keys_ = jax.random.normal(kk, (B, L, H, D), dtype=jnp.float32)
    values = jax.random.normal(kv, (B, L, H, D), dtype=jnp.float32)

    # torch.randint(L_K, (L_Q, sample_k)) equivalent, shared across batch/head.
    L_K = L
    U_part = min(int(factor * math.ceil(math.log(L_K))), L_K)
    index_sample = jax.random.randint(ks, (L, U_part), 0, L_K, dtype=jnp.int32)

    out, attn = prob_attention(queries, keys_, values, index_sample,
                               factor=factor)
    out = jax.block_until_ready(out)

    out_ref, _ = prob_attention_reference(queries, keys_, values, index_sample,
                                          factor=factor)
    assert out.shape == (B, L, H, D)
    assert attn is None
    max_err = float(jnp.max(jnp.abs(out - out_ref)))
    assert jnp.allclose(out, out_ref, atol=1e-2, rtol=1e-2), max_err

    print("KERNEL_OK")
</pallas_src>

<mosaic_0001>
module attributes {stable_mosaic.version = 11 : i64} {
  func.func @_sparse_attn_core_kernel(%arg0: i32, %arg1: memref<1x25x128xf32, #tpu.memory_space<vmem>>, %arg2: memref<1x128x128xf32, #tpu.memory_space<vmem>>, %arg3: memref<1x128x128xf32, #tpu.memory_space<vmem>>, %arg4: memref<1x25x1xi32, #tpu.memory_space<vmem>>, %arg5: memref<1x25x128xf32, #tpu.memory_space<vmem>>) attributes {dimension_semantics = [#tpu.dimension_semantics<parallel>], iteration_bounds = array<i64: 8>, scalar_prefetch = 0 : i64, scratch_operands = 0 : i64, tpu.core_type = #tpu.core_type<tc>, window_params = [{transform_indices = @transform_0, window_bounds = array<i64: 1, 25, 128>}, {transform_indices = @transform_1, window_bounds = array<i64: 1, 128, 128>}, {transform_indices = @transform_2, window_bounds = array<i64: 1, 128, 128>}, {transform_indices = @transform_3, window_bounds = array<i64: 1, 25, 1>}, {transform_indices = @transform_4, window_bounds = array<i64: 1, 25, 128>}]} {
    %c0 = arith.constant 0 : index
    %c0_0 = arith.constant 0 : index
    %c0_1 = arith.constant 0 : index
    %0 = vector.load %arg1[%c0, %c0_0, %c0_1] : memref<1x25x128xf32, #tpu.memory_space<vmem>>, vector<1x25x128xf32>
    %1 = vector.shape_cast %0 : vector<1x25x128xf32> to vector<25x128xf32>
    %c0_2 = arith.constant 0 : index
    %c0_3 = arith.constant 0 : index
    %c0_4 = arith.constant 0 : index
    %2 = vector.load %arg2[%c0_2, %c0_3, %c0_4] : memref<1x128x128xf32, #tpu.memory_space<vmem>>, vector<1x128x128xf32>
    %3 = vector.shape_cast %2 : vector<1x128x128xf32> to vector<128x128xf32>
    %c0_5 = arith.constant 0 : index
    %c0_6 = arith.constant 0 : index
    %c0_7 = arith.constant 0 : index
    %4 = vector.load %arg3[%c0_5, %c0_6, %c0_7] : memref<1x128x128xf32, #tpu.memory_space<vmem>>, vector<1x128x128xf32>
    %5 = vector.shape_cast %4 : vector<1x128x128xf32> to vector<128x128xf32>
    %cst = arith.constant dense<0.000000e+00> : vector<25x128xf32>
    %6 = tpu.matmul %1, %3, %cst {dimension_numbers = #tpu.dot_dimension_numbers<[1], [1], [0], [0], [0, 0, 1, 0], [], []>} : vector<25x128xf32>, vector<128x128xf32>, vector<25x128xf32> -> vector<25x128xf32>
    %cst_8 = arith.constant 0.0883883461 : f32
    %7 = vector.broadcast %cst_8 : f32 to vector<25x128xf32>
    %8 = arith.mulf %6, %7 : vector<25x128xf32>
    %c0_9 = arith.constant 0 : index
    %c0_10 = arith.constant 0 : index
    %c0_11 = arith.constant 0 : index
    %9 = vector.load %arg4[%c0_9, %c0_10, %c0_11] : memref<1x25x1xi32, #tpu.memory_space<vmem>>, vector<1x25x1xi32>
    %10 = vector.shape_cast %9 : vector<1x25x1xi32> to vector<25x1xi32>
    %11 = tpu.iota {dimensions = array<i32: 1>} : vector<25x128xi32>
    %12 = vector.broadcast %10 : vector<25x1xi32> to vector<25x128xi32>
    %13 = arith.cmpi sgt, %11, %12 : vector<25x128xi32>
    %cst_12 = arith.constant 0xFF800000 : f32
    %14 = vector.broadcast %cst_12 : f32 to vector<25x128xf32>
    %15 = arith.select %13, %14, %8 : vector<25x128xi1>, vector<25x128xf32>
    %cst_13 = arith.constant dense<0xFF800000> : vector<25xf32>
    %16 = vector.multi_reduction <maximumf>, %15, %cst_13 [1] : vector<25x128xf32> to vector<25xf32>
    %17 = vector.shape_cast %16 : vector<25xf32> to vector<25x1xf32>
    %18 = vector.broadcast %17 : vector<25x1xf32> to vector<25x128xf32>
    %19 = arith.subf %15, %18 : vector<25x128xf32>
    %20 = math.exp %19 : vector<25x128xf32>
    %cst_14 = arith.constant dense<0.000000e+00> : vector<25xf32>
    %21 = vector.multi_reduction <add>, %20, %cst_14 [1] : vector<25x128xf32> to vector<25xf32>
    %22 = vector.shape_cast %21 : vector<25xf32> to vector<25x1xf32>
    %23 = vector.broadcast %22 : vector<25x1xf32> to vector<25x128xf32>
    %24 = arith.divf %20, %23 : vector<25x128xf32>
    %cst_15 = arith.constant dense<0.000000e+00> : vector<25x128xf32>
    %25 = tpu.matmul %24, %5, %cst_15 {dimension_numbers = #tpu.dot_dimension_numbers<[1], [0], [0], [1], [0, 0, 1, 1], [], []>} : vector<25x128xf32>, vector<128x128xf32>, vector<25x128xf32> -> vector<25x128xf32>
    %c0_16 = arith.constant 0 : index
    %c0_17 = arith.constant 0 : index
    %c0_18 = arith.constant 0 : index
    %26 = vector.load %arg5[%c0_16, %c0_17, %c0_18] : memref<1x25x128xf32, #tpu.memory_space<vmem>>, vector<1x25x128xf32>
    %27 = vector.shape_cast %26 : vector<1x25x128xf32> to vector<25x128xf32>
    %28 = vector.shape_cast %25 : vector<25x128xf32> to vector<1x25x128xf32>
    tpu.vector_store %arg5[%c0_16, %c0_17, %c0_18], %28 {strides = array<i32>} : memref<1x25x128xf32, #tpu.memory_space<vmem>>, vector<1x25x128xf32>,
    return
  }
  func.func @transform_0(%arg0: i32) -> (i32, i32, i32) {
    %c0_i32 = arith.constant 0 : i32
    %c0_i32_0 = arith.constant 0 : i32
    %c0_i32_1 = arith.constant 0 : i32
    return %arg0, %c0_i32, %c0_i32_0 : i32, i32, i32
  }
  func.func @transform_1(%arg0: i32) -> (i32, i32, i32) {
    %c0_i32 = arith.constant 0 : i32
    %c0_i32_0 = arith.constant 0 : i32
    %c0_i32_1 = arith.constant 0 : i32
    return %arg0, %c0_i32, %c0_i32_0 : i32, i32, i32
  }
  func.func @transform_2(%arg0: i32) -> (i32, i32, i32) {
    %c0_i32 = arith.constant 0 : i32
    %c0_i32_0 = arith.constant 0 : i32
    %c0_i32_1 = arith.constant 0 : i32
    return %arg0, %c0_i32, %c0_i32_0 : i32, i32, i32
  }
  func.func @transform_3(%arg0: i32) -> (i32, i32, i32) {
    %c0_i32 = arith.constant 0 : i32
    %c0_i32_0 = arith.constant 0 : i32
    %c0_i32_1 = arith.constant 0 : i32
    return %arg0, %c0_i32, %c0_i32_0 : i32, i32, i32
  }
  func.func @transform_4(%arg0: i32) -> (i32, i32, i32) {
    %c0_i32 = arith.constant 0 : i32
    %c0_i32_0 = arith.constant 0 : i32
    %c0_i32_1 = arith.constant 0 : i32
    return %arg0, %c0_i32, %c0_i32_0 : i32, i32, i32
  }
}

</mosaic_0001>

<bundles_post_ra>
// kernel: tpu_custom_call.1
= control target key start
LH: loop header
LB: loop body
LE: loop exit
PB: predicated region body
PF: predicated region fallthrough
CT: control target
= control target key end

     0   :  { %9 = vsyncpa [#allocation3], 0  ;;  %s1242_s0 = inlined_call_operand.vmem [shape: f32[8,25,128], index: 0, kind: input, shape index: {}]   ;;  %s1243_s1 = inlined_call_operand.hbm [shape: f32[8,128,128], index: 1, kind: input, shape index: {}]   ;;  %s1244_s2 = inlined_call_operand.hbm [shape: f32[8,128,128], index: 2, kind: input, shape index: {}]   ;;  %s1245_s3 = inlined_call_operand.vmem [shape: s32[8,25,1], index: 3, kind: input, shape index: {}]   ;;  %s1246_s4 = inlined_call_operand.vmem [shape: f32[8,25,128], index: 4, kind: output, shape index: {}]  }
   0x1   :  { %11 = vsyncpa [#allocation3 + $0x1], 0 }
   0x2   :  { %12 = vsyncpa [#allocation5], 0 }
   0x3   :  { %14 = vsyncpa [#allocation5 + $0x1], 0  ;;  %s1023_s15 = smov 0   ;;  %s1025_s16 = smov 0  }
   0x4   :  { %s1027_s17 = smov 0   ;;  %s1029_s18 = smov 0  }
   0x5 LB: > { %s1042_s19 = sadd.s32 4294967295, %s991_s18   ;;  %s1045_s20 = sadd.s32 1, %s991_s18   ;;  %s991_s18 = sphi %s1029_s18, %s1256_s18   ;;  %s987_s17 = sphi %s1027_s17, %s1255_s17   ;;  %s983_s16 = sphi %s1025_s16, %s1254_s16   ;;  %s979_s15 = sphi %s1023_s15, %s1253_s15  }
   0x6   : > { %s50_s21 = ssub.s32 %s991_s18, %s1045_s20  ;;  %s53_s22 = sadd.s32 1, %s987_s17 }
   0x7   : > { %p51_p0 = scmp.eq.s32.totalorder %s50_s21, 0  ;;  %p60_p1 = scmp.ne.s32.totalorder %s987_s17, %s983_s16 }
   0x8   : > { %p61_p2 = scmp.eq.s32.totalorder %s991_s18, 0  ;;  %p66_p3 = scmp.ne.s32.totalorder %s983_s16, %s979_s15 }
   0x9   : > { %s1055_s23 = scalar_select %p51_p0, %s987_s17, %s53_s22  }
   0xa   : > { %p62_p4 = por %p61_p2, %p60_p1  ;;  %p67_p5 = scmp.eq.s32.totalorder %s1042_s19, 0 }
   0xb   : > { %p843_p6 = scmp.lt.s32.totalorder %s991_s18, 8  ;;  %s1064_s25 = sand.u32 1, %s987_s17  }
   0xc   : > { %p1059_p7 = por %p67_p5, %p66_p3  ;;  %s694_s26 = sshll.u32 %s1064_s25, 7 }
   0xd   : > { %s711_s27 = sshll.u32 %s991_s18, 11  ;;  %s180_s5 = scalar_lea.vmem [#allocation2], %s694_s26 }
   0xe   : > { %s1248_s24 = scalar_select %p1059_p7, 1, 0 }
   0xf   : > { %s1073_s30 = scalar_lea.hbm %s1243_s1, %s711_s27  ;;  %s187_s6 = sshll.u32 %s180_s5, 4  ;;  %s1077_s6 = int_to_ptr.vmem [resolvable:$true] %s187_s6 }
  0x10   : > { %p1079_p8 = pnand %p843_p6, %p62_p4  ;;  %s177_s8 = scalar_lea.sflag [#allocation3], %s1064_s25 }
  0x11   : > { %s897_s9 = scalar_lea.hbm %s1073_s30, 2048  ;;  %s902_s12 = scalar_lea.hbm %s1243_s1, 16384 }
  0x12   : > { %p898_p10 = scmp.ne.s32.totalorder %s1073_s30, %s897_s9  ;;  %p899_p11 = pneg %p1079_p8 }
  0x13   : > { %p903_p0 = scmp.lt.s32.totalorder %s1073_s30, %s1243_s1  ;;  %p904_p1 = scmp.lt.s32.totalorder %s902_s12, %s897_s9 }
  0x14   : > { %p900_p12 = pnand %p899_p11, %p898_p10 }
  0x15   : > { %p905_p2 = por %p904_p1, %p903_p0 }
  0x16   : > { %p901_p13 = pneg %p900_p12 }
  0x18   : > { %p906_p3 = pnand %p905_p2, %p901_p13 }
  0x1a   : > { %909 = shalt.err (!%p906_p3)
}
  0x1b   : > { %s910_s15 = scalar_lea.vmem %s1077_s6, 2048  ;;  %s993_s21 = smov [#allocation2]  }
  0x1c   : > { %p911_p4 = scmp.ne.s32.totalorder %s1077_s6, %s910_s15  ;;  %s915_s22 = sshll.u32 %s993_s21, 4  ;;  %s916_s22 = int_to_ptr.vmem [resolvable:$false] %s915_s22 }
  0x1d   : > { %s917_s28 = scalar_lea.vmem %s916_s22, 4096  ;;  %p918_p10 = scmp.lt.s32.totalorder %s1077_s6, %s916_s22 }
  0x1e   : > { %p913_p5 = pnand %p911_p4, %p899_p11  ;;  %p919_p12 = scmp.lt.s32.totalorder %s917_s28, %s910_s15 }
  0x20   : > { %p914_p6 = pneg %p913_p5  ;;  %p920_p9 = por %p919_p12, %p918_p10 }
  0x22   : > { %p921_p0 = pnand %p920_p9, %p914_p6 }
  0x24   : > { %924 = shalt.err (!%p921_p0)
}
  0x25   : > { %s994_s29 = smov 128   ;;  %s995_s5 = smov 8  }
  0x26   : > { %839 = dma.hbm_to_vmem [thread:$0]  (!%p1079_p8), %s1073_s30, 2048, %s1077_s6, %s177_s8, %s994_s29, %s994_s29, %s995_s5  }
  0x27   : > { %p224_p9 = scmp.lt.s32.totalorder %s991_s18, 9  ;;  %s1120_s11 = scalar_lea.hbm %s1244_s2, %s711_s27 }
  0x28   : > { %p1250_p13 = scmp.ge.s32.totalorder %s991_s18, 1  ;;  %s201_s13 = scalar_lea.vmem [#allocation4], %s694_s26 }
  0x29   : > { %s208_s14 = sshll.u32 %s201_s13, 4  ;;  %s198_s30 = scalar_lea.sflag [#allocation5], %s1064_s25  ;;  %s1130_s14 = int_to_ptr.vmem [resolvable:$true] %s208_s14 }
  0x2a   : > { %p1124_p1 = pnand %p1250_p13, %p224_p9  ;;  %s925_s6 = scalar_lea.hbm %s1120_s11, 2048 }
  0x2b   : > { %p926_p2 = scmp.ne.s32.totalorder %s1120_s11, %s925_s6  ;;  %s930_s8 = scalar_lea.hbm %s1244_s2, 16384 }
  0x2c   : > { %p931_p5 = scmp.lt.s32.totalorder %s1120_s11, %s1244_s2  ;;  %p932_p6 = scmp.lt.s32.totalorder %s930_s8, %s925_s6 }
  0x2d   : > { %p928_p3 = pnand %p926_p2, %p899_p11 }
  0x2e   : > { %p933_p10 = por %p932_p6, %p931_p5 }
  0x2f   : > { %p929_p4 = pneg %p928_p3 }
  0x31   : > { %p934_p12 = pnand %p933_p10, %p929_p4 }
  0x33   : > { %937 = shalt.err (!%p934_p12)
}
  0x34   : > { %s938_s25 = scalar_lea.vmem %s1130_s14, 2048  ;;  %s996_s26 = smov [#allocation4]  }
  0x35   : > { %p939_p0 = scmp.ne.s32.totalorder %s1130_s14, %s938_s25  ;;  %s943_s22 = sshll.u32 %s996_s26, 4  ;;  %s944_s22 = int_to_ptr.vmem [resolvable:$false] %s943_s22 }
  0x36   : > { %s945_s28 = scalar_lea.vmem %s944_s22, 4096  ;;  %p946_p2 = scmp.lt.s32.totalorder %s1130_s14, %s944_s22 }
  0x37   : > { %p941_p9 = pnand %p939_p0, %p899_p11  ;;  %p947_p3 = scmp.lt.s32.totalorder %s945_s28, %s938_s25 }
  0x39   : > { %p942_p13 = pneg %p941_p9  ;;  %p948_p7 = por %p947_p3, %p946_p2 }
  0x3b   : > { %p949_p5 = pnand %p948_p7, %p942_p13 }
  0x3d   : > { %952 = shalt.err (!%p949_p5)
}
  0x3e   : > { %842 = dma.hbm_to_vmem [thread:$0]  (!%p1079_p8), %s1120_s11, 2048, %s1130_s14, %s198_s30, %s994_s29, %s994_s29, %s995_s5  }
  0x3f   : > { %228 = sbr.rel (%p1124_p1) target bundleno = 850 (0x352), region = 36  ;;  %s230_s9 = sand.u32 (!%p1124_p1), 1, %s983_s16  }
  0x40   : > { %s701_s10 = sshll.u32 (!%p1124_p1), %s230_s9, 7  ;;  %s231_s13 = scalar_lea.sflag (!%p1124_p1), [#allocation3], %s230_s9 }
  0x41   : > { %s1161_s6 = scalar_lea.vmem (!%p1124_p1), [#allocation2], %s701_s10  ;;  %p1252_p7 = scmp.ne.s32.totalorder (!%p1124_p1), %s1248_s24, 0 }
  0x44   : > { %970 = dma.done.wait (%p1252_p7), %s231_s13, 2048  }
  0x45   : > { %972 = vsyncadd (%p1252_p7), %s231_s13, 4294965248  ;;  %s240_s7 = scalar_lea.sflag [#allocation5], %s230_s9  ;;  %s1167_s18 = scalar_lea.vmem [#allocation4], %s701_s10 }
  0x46   : > { %974 = dma.done.wait (%p1252_p7), %s240_s7, 2048  }
  0x47   : > { %976 = vsyncadd (%p1252_p7), %s240_s7, 4294965248  ;;  %p283_p8 = scmp.lt.s32.totalorder %s1042_s19, 7  ;;  %v997_v0 = vmov 0   ;;  %v317_v1 = vld [vmem:[%s1161_s6 + $0x78] sm:$0xff]  ;;  %v316_v2 = vld [vmem:[%s1161_s6 + $0x70] sm:$0xff]  ;;  %v427_v26 = vlaneseq  ;;  %vm455_vm4 = vcmask 1040384  }
  0x48   : > { %879 = vset.pattern.permute.xlu0 %v997_v0  ;;  %880 = vset.pattern.permute.xlu1 %v997_v0  ;;  %v315_v3 = vld [vmem:[%s1161_s6 + $0x68] sm:$0xff]  ;;  %v314_v7 = vld [vmem:[%s1161_s6 + $0x60] sm:$0xff]  ;;  %v313_v10 = vld [vmem:[%s1161_s6 + $0x58] sm:$0xff] }
  0x49   : > { %s1258_s19 = smov (!%p283_p8, %s1042_s19), 7  ;;  %756 = vmatprep.subr.mxu0 %v317_v1  ;;  %v312_v11 = vld [vmem:[%s1161_s6 + $0x50] sm:$0xff]  ;;  %v311_v12 = vld [vmem:[%s1161_s6 + $0x48] sm:$0xff]  ;;  %v310_v13 = vld [vmem:[%s1161_s6 + $0x40] sm:$0xff]  ;;  %v428_v27 = vand.u32 127, %v427_v26 }
  0x4a   : > { %s1175_s29 = sshll.u32 %s1258_s19, 5  ;;  %757 = vmatpush3.xpose.msra.mxu0 %v317_v1  ;;  %v309_v14 = vld [vmem:[%s1161_s6 + $0x38] sm:$0xff]  ;;  %v308_v15 = vld [vmem:[%s1161_s6 + $0x30] sm:$0xff]  ;;  %v307_v16 = vld [vmem:[%s1161_s6 + $0x28] sm:$0xff] }
  0x4b   : > { %s1183_s11 = scalar_lea.vmem %s1242_s0, %s1175_s29  ;;  %758 = vmatprep.subr.mxu0 %v316_v2  ;;  %s292_s30 = scalar_lea.vmem %s1245_s3, %s1175_s29  ;;  %v306_v17 = vld [vmem:[%s1161_s6 + $0x20] sm:$0xff]  ;;  %v305_v18 = vld [vmem:[%s1161_s6 + $0x18] sm:$0xff]  ;;  %v304_v19 = vld [vmem:[%s1161_s6 + $0x10] sm:$0xff] }
  0x4c   : > { %v298_v4 = vld [vmem:[%s1183_s11] sm:$0xff]  ;;  %v426_v6 = vld [vmem:[%s292_s30 + $0x18] sm:$0x1]  ;;  %v424_v8 = vld [vmem:[%s292_s30 + $0x8] sm:$0xff]  ;;  %s297_s8 = scalar_lea.vmem %s1246_s4, %s1175_s29 }
  0x4d   : > { %788 = vmatprep.mubr.f32.mxu0 %v298_v4  ;;  %v423_v5 = vld [vmem:[%s292_s30] sm:$0xff]  ;;  %439 = vperm.xlu1 %880, %v426_v6   ;;  %v425_v9 = vld [vmem:[%s292_s30 + $0x10] sm:$0xff]  ;;  %v303_v20 = vld [vmem:[%s1161_s6 + $0x8] sm:$0xff] }
  0x4e   : > { %759 = vmatpush3.xpose.msra.mxu0 %v316_v2  ;;  %430 = vperm.xlu0 %879, %v423_v5   ;;  %v302_v21 = vld [vmem:[%s1161_s6] sm:$0xff]  ;;  %v299_v22 = vld [vmem:[%s1183_s11 + $0x8] sm:$0xff]  ;;  %v300_v23 = vld [vmem:[%s1183_s11 + $0x10] sm:$0xff] }
  0x4f   : > { %760 = vmatprep.subr.mxu0 %v315_v3  ;;  %v301_v24 = vld [vmem:[%s1183_s11 + $0x18] sm:$0x1]  ;;  %v332_v45 = vld [vmem:[%s1167_s18 + $0x70] sm:$0xff]  ;;  %v331_v46 = vld [vmem:[%s1167_s18 + $0x68] sm:$0xff] }
  0x50   : > { %v333_v44 = vld [vmem:[%s1167_s18 + $0x78] sm:$0xff]  ;;  %v330_v47 = vld [vmem:[%s1167_s18 + $0x60] sm:$0xff]  ;;  %v328_v49 = vld [vmem:[%s1167_s18 + $0x50] sm:$0xff] }
  0x51   : > { %436 = vperm.xlu1 %880, %v425_v9   ;;  %794 = vmatprep.subr.mxu1 %v333_v44  ;;  %v329_v48 = vld [vmem:[%s1167_s18 + $0x58] sm:$0xff]  ;;  %v327_v50 = vld [vmem:[%s1167_s18 + $0x48] sm:$0xff]  ;;  %v326_v4 = vld [vmem:[%s1167_s18 + $0x40] sm:$0xff] }
  0x52   : > { %761 = vmatpush3.xpose.msra.mxu0 %v315_v3  ;;  %433 = vperm.xlu0 %879, %v424_v8   ;;  %v325_v5 = vld [vmem:[%s1167_s18 + $0x38] sm:$0xff]  ;;  %v324_v6 = vld [vmem:[%s1167_s18 + $0x30] sm:$0xff]  ;;  %v322_v8 = vld [vmem:[%s1167_s18 + $0x20] sm:$0xff] }
  0x53   : > { %762 = vmatprep.subr.mxu0 %v314_v7  ;;  %795 = vmatpush3.msra.mxu1 %v333_v44  ;;  %v321_v9 = vld [vmem:[%s1167_s18 + $0x18] sm:$0xff] }
  0x54   : > { %796 = vmatprep.subr.mxu1 %v332_v45 }
  0x55   : > { %797 = vmatpush3.msra.mxu1 %v332_v45 }
  0x56   : > { %763 = vmatpush3.xpose.msra.mxu0 %v314_v7  ;;  %798 = vmatprep.subr.mxu1 %v331_v46  ;;  %v323_v7 = vld [vmem:[%s1167_s18 + $0x28] sm:$0xff] }
  0x57   : > { %764 = vmatprep.subr.mxu0 %v313_v10  ;;  %799 = vmatpush3.msra.mxu1 %v331_v46 }
  0x58   : > { %800 = vmatprep.subr.mxu1 %v330_v47 }
  0x59   : > { %801 = vmatpush3.msra.mxu1 %v330_v47 }
  0x5a   : > { %765 = vmatpush3.xpose.msra.mxu0 %v313_v10  ;;  %802 = vmatprep.subr.mxu1 %v329_v48  ;;  %v320_v10 = vld [vmem:[%s1167_s18 + $0x10] sm:$0xff] }
  0x5b   : > { %766 = vmatprep.subr.mxu0 %v312_v11  ;;  %803 = vmatpush3.msra.mxu1 %v329_v48 }
  0x5c   : > { %804 = vmatprep.subr.mxu1 %v328_v49 }
  0x5d   : > { %805 = vmatpush3.msra.mxu1 %v328_v49 }
  0x5e   : > { %767 = vmatpush3.xpose.msra.mxu0 %v312_v11  ;;  %806 = vmatprep.subr.mxu1 %v327_v50  ;;  %v319_v11 = vld [vmem:[%s1167_s18 + $0x8] sm:$0xff] }
  0x5f   : > { %768 = vmatprep.subr.mxu0 %v311_v12  ;;  %807 = vmatpush3.msra.mxu1 %v327_v50 }
  0x60   : > { %808 = vmatprep.subr.mxu1 %v326_v4 }
  0x61   : > { %809 = vmatpush3.msra.mxu1 %v326_v4 }
  0x62   : > { %769 = vmatpush3.xpose.msra.mxu0 %v311_v12  ;;  %810 = vmatprep.subr.mxu1 %v325_v5  ;;  %v318_v12 = vld [vmem:[%s1167_s18] sm:$0xff] }
  0x63   : > { %770 = vmatprep.subr.mxu0 %v310_v13  ;;  %811 = vmatpush3.msra.mxu1 %v325_v5 }
  0x64   : > { %812 = vmatprep.subr.mxu1 %v324_v6 }
  0x65   : > { %813 = vmatpush3.msra.mxu1 %v324_v6 }
  0x66   : > { %771 = vmatpush3.xpose.msra.mxu0 %v310_v13  ;;  %814 = vmatprep.subr.mxu1 %v323_v7 }
  0x67   : > { %772 = vmatprep.subr.mxu0 %v309_v14  ;;  %815 = vmatpush3.msra.mxu1 %v323_v7 }
  0x68   : > { %816 = vmatprep.subr.mxu1 %v322_v8 }
  0x69   : > { %817 = vmatpush3.msra.mxu1 %v322_v8 }
  0x6a   : > { %773 = vmatpush3.xpose.msra.mxu0 %v309_v14  ;;  %818 = vmatprep.subr.mxu1 %v321_v9 }
  0x6b   : > { %774 = vmatprep.subr.mxu0 %v308_v15  ;;  %819 = vmatpush3.msra.mxu1 %v321_v9 }
  0x6c   : > { %820 = vmatprep.subr.mxu1 %v320_v10 }
  0x6d   : > { %821 = vmatpush3.msra.mxu1 %v320_v10 }
  0x6e   : > { %775 = vmatpush3.xpose.msra.mxu0 %v308_v15  ;;  %822 = vmatprep.subr.mxu1 %v319_v11 }
  0x6f   : > { %776 = vmatprep.subr.mxu0 %v307_v16  ;;  %823 = vmatpush3.msra.mxu1 %v319_v11 }
  0x70   : > { %824 = vmatprep.subr.mxu1 %v318_v12 }
  0x71   : > { %825 = vmatpush3.msra.mxu1 %v318_v12 }
  0x72   : > { %777 = vmatpush3.xpose.msra.mxu0 %v307_v16 }
  0x73   : > { %778 = vmatprep.subr.mxu0 %v306_v17 }
  0x76   : > { %779 = vmatpush3.xpose.msra.mxu0 %v306_v17 }
  0x77   : > { %780 = vmatprep.subr.mxu0 %v305_v18 }
  0x7a   : > { %781 = vmatpush3.xpose.msra.mxu0 %v305_v18 }
  0x7b   : > { %782 = vmatprep.subr.mxu0 %v304_v19 }
  0x7e   : > { %783 = vmatpush3.xpose.msra.mxu0 %v304_v19 }
  0x7f   : > { %784 = vmatprep.subr.mxu0 %v303_v20 }
  0x82   : > { %785 = vmatpush3.xpose.msra.mxu0 %v303_v20 }
  0x83   : > { %786 = vmatprep.subr.mxu0 %v302_v21 }
  0x86   : > { %787 = vmatpush3.xpose.msra.mxu0 %v302_v21 }
  0x89   : > { %789 = vmatmul.mubr.f32.vlgmr.msra.gmra.mxu0 %v299_v22 }
  0x8a   : > { %791 = vmatprep.mubr.f32.mxu0 %v300_v23 }
  0x8d   : > { %792 = vmatmul.mubr.f32.gmra.mxu0 %v301_v24 }
  0xc8   : > { %v440_v29 = vpop.permute.xlu1 %439 }
  0xc9   : > { %v431_v25 = vpop.permute.xlu0 %430  ;;  %vm444_vm3 = vcmp.gt.s32.totalorder %v428_v27, %v440_v29 }
  0xca   : > { %vm441_vm1 = vcmp.gt.s32.totalorder %v428_v27, %v431_v25 }
  0xcc   : > { %v437_v36 = vpop.permute.xlu1 %436 }
  0xcd   : > { %v434_v28 = vpop.permute.xlu0 %433  ;;  %vm443_vm2 = vcmp.gt.s32.totalorder %v428_v27, %v437_v36 }
  0xce   : > { %vm442_vm0 = vcmp.gt.s32.totalorder %v428_v27, %v434_v28 }
 0x149   : > { %v790_v30 = vpop.f32.mrf.mxu0 }
 0x14a   : > { %v420_v31 = vmul.f32 0.088388346, %v790_v30 }
 0x14b   : > { %v400_v32 = vpop.f32.mrf.mxu0 }
 0x14c   : > { %v419_v33 = vmul.f32 0.088388346, %v400_v32  ;;  %v446_v34 = vsel %vm442_vm0, -inf, %v420_v31 }
 0x14d   : > { %451 = vmax.xlane.f32.xlu1 %v446_v34  ;;  %v793_v35 = vpop.f32.mrf.mxu0 }
 0x14e   : > { %v445_v37 = vsel %vm441_vm1, -inf, %v419_v33  ;;  %v422_v38 = vmul.f32 0.088388346, %v793_v35 }
 0x14f   : > { %449 = vmax.xlane.f32.xlu0 %v445_v37  ;;  %v410_v39 = vpop.f32.mrf.mxu0 }
 0x150   : > { %v421_v40 = vmul.f32 0.088388346, %v410_v39  ;;  %v448_v42 = vsel %vm444_vm3, -inf, %v422_v38 }
 0x151   : > { %v456_v43 = vsel %vm455_vm4, %v448_v42, -inf }
 0x152   : > { %v447_v41 = vsel %vm443_vm2, -inf, %v421_v40 }
 0x153   : > { %453 = vmax.xlane.f32.xlu0 %v447_v41 }
 0x157   : > { %457 = vmax.xlane.f32.xlu0 %v456_v43 }
 0x1d6   : > { %v452_v51 = vpop.xlane.xlu1 %451 }
 0x1d7   : > { %v460_v52 = vsub.f32 %v446_v34, %v452_v51 }
 0x1d8   : > { %v450_v53 = vpop.xlane.xlu0 %449 }
 0x1d9   : > { %v465_v54 = vmul.f32 1.442695, %v460_v52  ;;  %v459_v55 = vsub.f32 %v445_v37, %v450_v53 }
 0x1db   : > { %881 = vpow2.f32 %v465_v54  ;;  %v463_v56 = vmul.f32 1.442695, %v459_v55 }
 0x1dc   : > { %v454_v57 = vpop.xlane.xlu0 %453 }
 0x1dd   : > { %883 = vpow2.f32 %v463_v56  ;;  %v461_v58 = vsub.f32 %v447_v41, %v454_v57 }
 0x1df   : > { %v467_v59 = vmul.f32 1.442695, %v461_v58 }
 0x1e0   : > { %v458_v60 = vpop.xlane.xlu0 %457 }
 0x1e1   : > { %885 = vpow2.f32 %v467_v59  ;;  %v462_v61 = vsub.f32 %v448_v42, %v458_v60 }
 0x1e3   : > { %v469_v62 = vmul.f32 1.442695, %v462_v61 }
 0x1e5   : > { %887 = vpow2.f32 %v469_v62 }
 0x1e8   : > { %v882_v63 = vpop.eup %881 }
 0x1e9   : > { %473 = vadd.xlane.f32.xlu0 %v882_v63 }
 0x1ea   : > { %v884_v0 = vpop.eup %883 }
 0x1eb   : > { %471 = vadd.xlane.f32.xlu1 %v884_v0 }
 0x1ee   : > { %v886_v1 = vpop.eup %885 }
 0x1ef   : > { %475 = vadd.xlane.f32.xlu1 %v886_v1 }
 0x1f2   : > { %v888_v2 = vpop.eup %887 }
 0x1f3   : > { %v477_v3 = vsel %vm455_vm4, %v888_v2, 0.0 }
 0x1f4   : > { %478 = vadd.xlane.f32.xlu0 %v477_v3 }
 0x272   : > { %v474_v13 = vpop.xlane.xlu0 %473 }
 0x273   : > { %889 = vrcp.f32 %v474_v13 }
 0x274   : > { %v472_v14 = vpop.xlane.xlu1 %471 }
 0x275   : > { %891 = vrcp.f32 %v472_v14 }
 0x278   : > { %v476_v15 = vpop.xlane.xlu1 %475 }
 0x279   : > { %893 = vrcp.f32 %v476_v15 }
 0x27d   : > { %v479_v16 = vpop.xlane.xlu0 %478 }
 0x27e   : > { %895 = vrcp.f32 %v479_v16 }
 0x280   : > { %v890_v17 = vpop.eup %889 }
 0x281   : > { %v483_v20 = vmul.f32 %v890_v17, %v882_v63 }
 0x282   : > { %v892_v18 = vpop.eup %891 }
 0x283   : > { %v481_v19 = vmul.f32 %v892_v18, %v884_v0 }
 0x285   : > { %826 = vmatprep.mubr.f32.mxu1 %v481_v19 }
 0x286   : > { %v894_v21 = vpop.eup %893  ;;  %827 = vmatmul.mubr.f32.vlgmr.msra.gmra.mxu1 %v483_v20 }
 0x287   : > { %v485_v22 = vmul.f32 %v894_v21, %v886_v1 }
 0x289   : > { %829 = vmatprep.mubr.f32.mxu1 %v485_v22 }
 0x28b   : > { %v896_v23 = vpop.eup %895 }
 0x28c   : > { %v487_v24 = vmul.f32 %v896_v23, %v888_v2 }
 0x28e   : > { %830 = vmatmul.mubr.f32.gmra.mxu1 %v487_v24 }
 0x346   : > { %v828_v25 = vpop.f32.mrf.mxu1 }
 0x347   : > { %574 = vst [vmem:[%s297_s8 + $0x8] sm:$0xff] %v828_v25 }
 0x348   : > { %v554_v26 = vpop.f32.mrf.mxu1 }
 0x349   : > { %573 = vst [vmem:[%s297_s8] sm:$0xff] %v554_v26 }
 0x34e   : > { %v831_v27 = vpop.f32.mrf.mxu1 }
 0x34f   : > { %576 = vst [vmem:[%s297_s8 + $0x18] sm:$0x1] %v831_v27 }
 0x350   : > { %v564_v28 = vpop.f32.mrf.mxu1 }
 0x351   : > { %575 = vst [vmem:[%s297_s8 + $0x10] sm:$0xff] %v564_v28 }
 0x352 PF: > { %p17_p11 = scmp.ge.s32.totalorder %s1045_s20, 10   ;;  %s1253_s15 = smov %s983_s16 }
 0x353   : > { %s1254_s16 = smov %s987_s17  ;;  %s1255_s17 = smov %s1055_s23 }
 0x354   : > { %s1256_s18 = smov %s1045_s20  ;;  %19 = sbr.rel (!%p17_p11) target bundleno = 5 (0x5), region = 95 }
 0x359   :  { %598 = vsyncpa [#allocation3], 1 }
 0x35a   :  { %600 = vsyncpa [#allocation3 + $0x1], 1 }
 0x35b   :  { %601 = vsyncpa [#allocation5], 1 }
 0x35c   :  { %603 = vsyncpa [#allocation5 + $0x1], 1 }

</bundles_post_ra>
